<compile_context>
chip_gen: v6e
topology: v6e:2x2x1
jax: 0.10.0
libtpu: 0.0.40
codegen_flags: <defaults>
</compile_context>

<pallas_src>
import functools
import math

import jax
import jax.numpy as jnp
from jax.experimental import pallas as pl
from jax.experimental.pallas import tpu as pltpu

_SUBLANE = 8
_MAX_TILE_B = 512  # 512-row tiles ~85% of HBM roofline (mem-bound measurement)


def _round_up(n, m):
    return ((n + m - 1) // m) * m


def _round_down(n, m):
    return (n // m) * m


def _apply_acti(y, acti):
    if acti == "relu":
        return jnp.maximum(y, 0.0)
    if acti == "sigmoid":
        return jax.nn.sigmoid(y)
    if acti == "softplus":
        return jax.nn.softplus(y)
    if acti == "leakyrelu":
        # F.leaky_relu default negative_slope = 0.01
        return jnp.where(y >= 0.0, y, 0.01 * y)
    # any other string -> no activation (matches the PyTorch if/elif chain)
    return y


def _mlp_fused_kernel(*refs, acti, n_layers):
    # refs = (x_ref, w0_ref, b0_ref, w1_ref, b1_ref, ..., o_ref)
    x_ref = refs[0]
    o_ref = refs[1 + 2 * n_layers]
    y = x_ref[...]
    if y.dtype != jnp.float32:
        y = y.astype(jnp.float32)
    for i in range(n_layers):
        w = refs[1 + 2 * i][...]
        b = refs[2 + 2 * i][...]
        lhs = y.astype(w.dtype) if w.dtype != jnp.float32 else y
        y = jnp.dot(lhs, w, preferred_element_type=jnp.float32)
        y = y + b.astype(jnp.float32)
        if i < n_layers - 1:  # no activation after the last layer
            y = _apply_acti(y, acti)
    o_ref[...] = y.astype(o_ref.dtype)


def _pick_tile_b(B):
    """Fixed batch tile (multiple of 8); grid >= 2 whenever B >= 16."""
    b8 = _round_up(max(B, _SUBLANE), _SUBLANE)
    if b8 < 2 * _SUBLANE:
        return b8  # single 8-row tile; nothing to shard or pipeline
    half = max(_SUBLANE, _round_down(b8 // 2, _SUBLANE))
    return min(_MAX_TILE_B, half)


@functools.partial(jax.jit, static_argnames=("acti",))
def mlp_forward_pallas(x, params, *, acti):
    """Fused MLP forward.

    x:      [B, Din] (any float dtype; computed in f32)
    params: list of (w_t [Din_i, Dout_i], b [1, Dout_i]) — true (unpadded)
            shapes, f32 or bf16.
    """
    B, Din = x.shape
    n_layers = len(params)
    dout_last = params[-1][0].shape[1]

    if x.dtype != jnp.float32:
        x = x.astype(jnp.float32)

    tile_b = _pick_tile_b(B)
    B_pad = _round_up(max(B, tile_b), tile_b)
    xp = x if B_pad == B else jnp.pad(x, ((0, B_pad - B), (0, 0)))
    grid = (B_pad // tile_b,)

    in_specs = [pl.BlockSpec((tile_b, Din), lambda i: (i, 0))]
    flat_params = []
    for (w, b) in params:
        flat_params.append(w)
        flat_params.append(b)
        # Constant block index across the grid -> single buffer (weights stay
        # VMEM-resident; no pointless double-buffering).
        in_specs.append(pl.BlockSpec(w.shape, lambda i: (0, 0),
                                     pipeline_mode=pl.Buffered(1)))
        in_specs.append(pl.BlockSpec(b.shape, lambda i: (0, 0),
                                     pipeline_mode=pl.Buffered(1)))
    out_spec = pl.BlockSpec((tile_b, dout_last), lambda i: (i, 0))

    # Advisory cost on the real shapes.
    flops = 2 * B_pad * sum(w.shape[0] * w.shape[1] for w, _ in params)
    transcendentals = (B_pad * sum(w.shape[1] for w, _ in params[:-1])
                       if acti in ("sigmoid", "softplus") else 0)
    param_bytes = sum(w.size * w.dtype.itemsize + b.size * b.dtype.itemsize
                      for w, b in params)
    bytes_accessed = (xp.size * xp.dtype.itemsize
                      + param_bytes
                      + B_pad * dout_last * 4)

    # VMEM budget: x/out tiles double-buffered, weights single-buffered, plus
    # headroom for the widest intermediate activation tile.
    max_feat = max([Din, dout_last] + [w.shape[1] for w, _ in params])
    footprint = (2 * 4 * tile_b * (Din + dout_last)
                 + param_bytes
                 + 2 * 4 * tile_b * max_feat)
    vmem_limit = None
    if footprint > 12 * (1 << 20):  # ~75% of v5e's 16 MiB scoped default
        vmem_limit = int(min(100 * (1 << 20), 2 * footprint))

    kernel = functools.partial(_mlp_fused_kernel, acti=acti, n_layers=n_layers)

    out = pl.pallas_call(
        kernel,
        out_shape=jax.ShapeDtypeStruct((B_pad, dout_last), jnp.float32),
        grid=grid,
        in_specs=in_specs,
        out_specs=out_spec,
        compiler_params=pltpu.CompilerParams(
            dimension_semantics=("parallel",),
            vmem_limit_bytes=vmem_limit),
        cost_estimate=pl.CostEstimate(
            flops=flops,
            transcendentals=transcendentals,
            bytes_accessed=bytes_accessed),
    )(xp, *flat_params)

    return out if B_pad == B else out[:B]


class MLPPallas:
    """Pallas re-implementation of laftr.py MLP.forward (fused single kernel)."""

    def __init__(self, shapes, acti, key, param_dtype=jnp.float32):
        self.acti = acti
        self.params = []         # f32 reference copies
        self.kernel_params = []  # copies fed to the kernel (f32 or bf16)
        for i in range(len(shapes) - 1):
            din, dout = shapes[i], shapes[i + 1]
            key, kw, kb = jax.random.split(key, 3)
            # Deterministic init mimicking nn.Linear: U(-1/sqrt(Din), 1/sqrt(Din))
            bound = 1.0 / math.sqrt(din)
            w = jax.random.uniform(kw, (dout, din), jnp.float32, -bound, bound)
            b = jax.random.uniform(kb, (dout,), jnp.float32, -bound, bound)
            w_t = w.T
            b2 = b.reshape(1, dout)
            self.params.append((w_t, b2))
            self.kernel_params.append((w_t.astype(param_dtype),
                                       b2.astype(param_dtype)))

    def __call__(self, x):
        return mlp_forward_pallas(x, self.kernel_params, acti=self.acti)


def _reference_forward(x, params, acti):
    # Pure-JAX f32 reference for sanity checking.
    n = len(params)
    for i, (w_t, b) in enumerate(params):
        x = x @ w_t + b
        if i == n - 1:
            break
        x = _apply_acti(x, acti)
    return x


if __name__ == "__main__":
    key = jax.random.PRNGKey(0)
    key, kx, kp, kp2, kp3 = jax.random.split(key, 5)

    # Small MLP: shapes = [32, 64, 32, 8], batch = 8
    shapes = [32, 64, 32, 8]
    batch = 8
    x = jax.random.normal(kx, (batch, shapes[0]), jnp.float32)

    # relu path (f32 weights)
    mlp = MLPPallas(shapes, "relu", kp)
    out = jax.block_until_ready(mlp(x))
    ref = _reference_forward(x, mlp.params, "relu")
    assert out.shape == (batch, shapes[-1])
    assert jnp.allclose(out, ref, atol=1e-5, rtol=1e-5)

    # sigmoid path
    mlp_s = MLPPallas(shapes, "sigmoid", kp2)
    out_s = jax.block_until_ready(mlp_s(x))
    ref_s = _reference_forward(x, mlp_s.params, "sigmoid")
    assert jnp.allclose(out_s, ref_s, atol=1e-5, rtol=1e-5)

    # bf16 weights (v6e/v7x MXU-native path); looser tolerance vs f32 reference.
    mlp_b = MLPPallas(shapes, "relu", kp3, param_dtype=jnp.bfloat16)
    out_b = jax.block_until_ready(mlp_b(x))
    ref_b = _reference_forward(x, mlp_b.params, "relu")
    assert jnp.allclose(out_b, ref_b, atol=5e-2, rtol=5e-2)

    # Batch not a multiple of the tile: exercises row padding + multi-step grid.
    xb = jax.random.normal(kx, (37, shapes[0]), jnp.float32)
    out37 = jax.block_until_ready(mlp(xb))
    ref37 = _reference_forward(xb, mlp.params, "relu")
    assert out37.shape == (37, shapes[-1])
    assert jnp.allclose(out37, ref37, atol=1e-5, rtol=1e-5)

    print("KERNEL_OK")
</pallas_src>

<mosaic_0001>
module attributes {stable_mosaic.version = 11 : i64} {
  func.func @_mlp_fused_kernel(%arg0: i32, %arg1: memref<8x32xf32, #tpu.memory_space<vmem>>, %arg2: memref<32x64xf32, #tpu.memory_space<vmem>>, %arg3: memref<1x64xf32, #tpu.memory_space<vmem>>, %arg4: memref<64x32xf32, #tpu.memory_space<vmem>>, %arg5: memref<1x32xf32, #tpu.memory_space<vmem>>, %arg6: memref<32x8xf32, #tpu.memory_space<vmem>>, %arg7: memref<1x8xf32, #tpu.memory_space<vmem>>, %arg8: memref<8x8xf32, #tpu.memory_space<vmem>>) attributes {dimension_semantics = [#tpu.dimension_semantics<parallel>], iteration_bounds = array<i64: 1>, scalar_prefetch = 0 : i64, scratch_operands = 0 : i64, tpu.core_type = #tpu.core_type<tc>, window_params = [{transform_indices = @transform_0, window_bounds = array<i64: 8, 32>}, {pipeline_mode = #tpu.pipeline_mode<synchronous>, transform_indices = @transform_1, window_bounds = array<i64: 32, 64>}, {pipeline_mode = #tpu.pipeline_mode<synchronous>, transform_indices = @transform_2, window_bounds = array<i64: 1, 64>}, {pipeline_mode = #tpu.pipeline_mode<synchronous>, transform_indices = @transform_3, window_bounds = array<i64: 64, 32>}, {pipeline_mode = #tpu.pipeline_mode<synchronous>, transform_indices = @transform_4, window_bounds = array<i64: 1, 32>}, {pipeline_mode = #tpu.pipeline_mode<synchronous>, transform_indices = @transform_5, window_bounds = array<i64: 32, 8>}, {pipeline_mode = #tpu.pipeline_mode<synchronous>, transform_indices = @transform_6, window_bounds = array<i64: 1, 8>}, {transform_indices = @transform_7, window_bounds = array<i64: 8, 8>}]} {
    %c0 = arith.constant 0 : index
    %c0_0 = arith.constant 0 : index
    %0 = vector.load %arg1[%c0, %c0_0] : memref<8x32xf32, #tpu.memory_space<vmem>>, vector<8x32xf32>
    %c0_1 = arith.constant 0 : index
    %c0_2 = arith.constant 0 : index
    %1 = vector.load %arg2[%c0_1, %c0_2] : memref<32x64xf32, #tpu.memory_space<vmem>>, vector<32x64xf32>
    %c0_3 = arith.constant 0 : index
    %c0_4 = arith.constant 0 : index
    %2 = vector.load %arg3[%c0_3, %c0_4] : memref<1x64xf32, #tpu.memory_space<vmem>>, vector<1x64xf32>
    %cst = arith.constant dense<0.000000e+00> : vector<8x64xf32>
    %3 = tpu.matmul %0, %1, %cst {dimension_numbers = #tpu.dot_dimension_numbers<[1], [0], [0], [1], [0, 0, 1, 1], [], []>} : vector<8x32xf32>, vector<32x64xf32>, vector<8x64xf32> -> vector<8x64xf32>
    %4 = vector.broadcast %2 : vector<1x64xf32> to vector<8x64xf32>
    %5 = arith.addf %3, %4 : vector<8x64xf32>
    %cst_5 = arith.constant 0.000000e+00 : f32
    %6 = vector.broadcast %cst_5 : f32 to vector<8x64xf32>
    %7 = arith.maximumf %5, %6 : vector<8x64xf32>
    %c0_6 = arith.constant 0 : index
    %c0_7 = arith.constant 0 : index
    %8 = vector.load %arg4[%c0_6, %c0_7] : memref<64x32xf32, #tpu.memory_space<vmem>>, vector<64x32xf32>
    %c0_8 = arith.constant 0 : index
    %c0_9 = arith.constant 0 : index
    %9 = vector.load %arg5[%c0_8, %c0_9] : memref<1x32xf32, #tpu.memory_space<vmem>>, vector<1x32xf32>
    %cst_10 = arith.constant dense<0.000000e+00> : vector<8x32xf32>
    %10 = tpu.matmul %7, %8, %cst_10 {dimension_numbers = #tpu.dot_dimension_numbers<[1], [0], [0], [1], [0, 0, 1, 1], [], []>} : vector<8x64xf32>, vector<64x32xf32>, vector<8x32xf32> -> vector<8x32xf32>
    %11 = vector.broadcast %9 : vector<1x32xf32> to vector<8x32xf32>
    %12 = arith.addf %10, %11 : vector<8x32xf32>
    %cst_11 = arith.constant 0.000000e+00 : f32
    %13 = vector.broadcast %cst_11 : f32 to vector<8x32xf32>
    %14 = arith.maximumf %12, %13 : vector<8x32xf32>
    %c0_12 = arith.constant 0 : index
    %c0_13 = arith.constant 0 : index
    %15 = vector.load %arg6[%c0_12, %c0_13] : memref<32x8xf32, #tpu.memory_space<vmem>>, vector<32x8xf32>
    %c0_14 = arith.constant 0 : index
    %c0_15 = arith.constant 0 : index
    %16 = vector.load %arg7[%c0_14, %c0_15] : memref<1x8xf32, #tpu.memory_space<vmem>>, vector<1x8xf32>
    %cst_16 = arith.constant dense<0.000000e+00> : vector<8x8xf32>
    %17 = tpu.matmul %14, %15, %cst_16 {dimension_numbers = #tpu.dot_dimension_numbers<[1], [0], [0], [1], [0, 0, 1, 1], [], []>} : vector<8x32xf32>, vector<32x8xf32>, vector<8x8xf32> -> vector<8x8xf32>
    %18 = vector.broadcast %16 : vector<1x8xf32> to vector<8x8xf32>
    %19 = arith.addf %17, %18 : vector<8x8xf32>
    %c0_17 = arith.constant 0 : index
    %c0_18 = arith.constant 0 : index
    %20 = vector.load %arg8[%c0_17, %c0_18] : memref<8x8xf32, #tpu.memory_space<vmem>>, vector<8x8xf32>
    tpu.vector_store %arg8[%c0_17, %c0_18], %19 {strides = array<i32>} : memref<8x8xf32, #tpu.memory_space<vmem>>, vector<8x8xf32>,
    return
  }
  func.func @transform_0(%arg0: i32) -> (i32, i32) {
    %c0_i32 = arith.constant 0 : i32
    %c0_i32_0 = arith.constant 0 : i32
    return %arg0, %c0_i32 : i32, i32
  }
  func.func @transform_1(%arg0: i32) -> (i32, i32) {
    %c0_i32 = arith.constant 0 : i32
    %c0_i32_0 = arith.constant 0 : i32
    %c0_i32_1 = arith.constant 0 : i32
    return %c0_i32, %c0_i32_0 : i32, i32
  }
  func.func @transform_2(%arg0: i32) -> (i32, i32) {
    %c0_i32 = arith.constant 0 : i32
    %c0_i32_0 = arith.constant 0 : i32
    %c0_i32_1 = arith.constant 0 : i32
    return %c0_i32, %c0_i32_0 : i32, i32
  }
  func.func @transform_3(%arg0: i32) -> (i32, i32) {
    %c0_i32 = arith.constant 0 : i32
    %c0_i32_0 = arith.constant 0 : i32
    %c0_i32_1 = arith.constant 0 : i32
    return %c0_i32, %c0_i32_0 : i32, i32
  }
  func.func @transform_4(%arg0: i32) -> (i32, i32) {
    %c0_i32 = arith.constant 0 : i32
    %c0_i32_0 = arith.constant 0 : i32
    %c0_i32_1 = arith.constant 0 : i32
    return %c0_i32, %c0_i32_0 : i32, i32
  }
  func.func @transform_5(%arg0: i32) -> (i32, i32) {
    %c0_i32 = arith.constant 0 : i32
    %c0_i32_0 = arith.constant 0 : i32
    %c0_i32_1 = arith.constant 0 : i32
    return %c0_i32, %c0_i32_0 : i32, i32
  }
  func.func @transform_6(%arg0: i32) -> (i32, i32) {
    %c0_i32 = arith.constant 0 : i32
    %c0_i32_0 = arith.constant 0 : i32
    %c0_i32_1 = arith.constant 0 : i32
    return %c0_i32, %c0_i32_0 : i32, i32
  }
  func.func @transform_7(%arg0: i32) -> (i32, i32) {
    %c0_i32 = arith.constant 0 : i32
    %c0_i32_0 = arith.constant 0 : i32
    return %arg0, %c0_i32 : i32, i32
  }
}

</mosaic_0001>

<bundles_post_ra>
// kernel: mlp_forward_pallas.1
= control target key start
LH: loop header
LB: loop body
LE: loop exit
PB: predicated region body
PF: predicated region fallthrough
CT: control target
= control target key end

     0   :  { %v395_v1 = vmov 0.0   ;;  %vm396_vm0 = vmmov 0   ;;  %s506_s0 = inlined_call_operand.vmem [shape: f32[8,32], index: 0, kind: input, shape index: {}]   ;;  %s507_s1 = inlined_call_operand.vmem [shape: f32[32,64], index: 1, kind: input, shape index: {}]   ;;  %s508_s2 = inlined_call_operand.vmem [shape: f32[1,64], index: 2, kind: input, shape index: {}]   ;;  %s509_s3 = inlined_call_operand.vmem [shape: f32[64,32], index: 3, kind: input, shape index: {}]   ;;  %s510_s4 = inlined_call_operand.vmem [shape: f32[1,32], index: 4, kind: input, shape index: {}]   ;;  %s511_s5 = inlined_call_operand.vmem [shape: f32[32,8], index: 5, kind: input, shape index: {}]   ;;  %s512_s6 = inlined_call_operand.vmem [shape: f32[1,8], index: 6, kind: input, shape index: {}]   ;;  %s513_s7 = inlined_call_operand.hbm [shape: f32[8,8], index: 7, kind: output, shape index: {}]  }
   0x1   :  { %v31_v0 = vld [vmem:[%s507_s1 + $0x18] sm:$0xff]  ;;  %329 = vmatprep.subr.mxu0 %v395_v1  ;;  %v30_v2 = vld [vmem:[%s507_s1 + $0x10] sm:$0xff]  ;;  %337 = vmatprep.mubr.msk.f32.mxu0 %vm396_vm0, %v395_v1  ;;  %v29_v5 = vld [vmem:[%s507_s1 + $0x8] sm:$0xff] }
   0x2   :  { %v121_v3 = vld [vmem:[%s509_s3 + $0x38] sm:$0xff]  ;;  %330 = vmatpush3.msra.mxu0 %v31_v0  ;;  %340 = vmatprep.subr.mxu1 %v395_v1  ;;  %v120_v4 = vld [vmem:[%s509_s3 + $0x30] sm:$0xff] }
   0x3   :  { %331 = vmatprep.subr.mxu0 %v395_v1  ;;  %341 = vmatpush3.msra.mxu1 %v121_v3 }
   0x4   :  { %12 = vsyncpa [#allocation3], 0  ;;  %332 = vmatpush3.msra.mxu0 %v30_v2  ;;  %342 = vmatprep.subr.mxu1 %v395_v1  ;;  %v119_v6 = vld [vmem:[%s509_s3 + $0x28] sm:$0xff]  ;;  %v28_v7 = vld [vmem:[%s507_s1] sm:$0xff]  ;;  %vm39_vm1 = vcmask 261120   ;;  %vm129_vm2 = vcmask 523264  }
   0x5   :  { %333 = vmatprep.subr.mxu0 %v395_v1  ;;  %343 = vmatpush3.msra.mxu1 %v120_v4  ;;  %v27_v8 = vld [vmem:[%s506_s0] sm:$0xff]  ;;  %v117_v10 = vld [vmem:[%s509_s3 + $0x18] sm:$0xff]  ;;  %v116_v11 = vld [vmem:[%s509_s3 + $0x10] sm:$0xff]  ;;  %s397_s14 = smov [#allocation2]   ;;  %vm288_vm3 = vcmask 64512  }
   0x6   :  { %334 = vmatpush3.msra.mxu0 %v29_v5  ;;  %344 = vmatprep.subr.mxu1 %v395_v1  ;;  %v118_v9 = vld [vmem:[%s509_s3 + $0x20] sm:$0xff]  ;;  %v115_v12 = vld [vmem:[%s509_s3 + $0x8] sm:$0xff]  ;;  %v207_v14 = vld [vmem:[%s511_s5 + $0x18] sm:$0xff]  ;;  %s296_s15 = sshll.u32 %s397_s14, 4  ;;  %s297_s15 = int_to_ptr.vmem [resolvable:$true] %s296_s15 }
   0x7   :  { %335 = vmatprep.subr.mxu0 %v395_v1  ;;  %345 = vmatpush3.msra.mxu1 %v119_v6  ;;  %v114_v13 = vld [vmem:[%s509_s3] sm:$0xff]  ;;  %v206_v20 = vld [vmem:[%s511_s5 + $0x10] sm:$0xff]  ;;  %v205_v21 = vld [vmem:[%s511_s5 + $0x8] sm:$0xff]  ;;  %p378_p1 = scmp.lt.s32.totalorder %s297_s15, %s297_s15 }
   0x8   :  { %336 = vmatpush3.msra.mxu0 %v28_v7  ;;  %346 = vmatprep.subr.mxu1 %v395_v1  ;;  %v304_v15 = vld [vmem:[%s508_s2] ss:$0 sm:$0xff] }
   0x9   :  { %338 = vmatmul.mubr.msk.f32.vlgmr.msra.gmra.mxu0 %vm39_vm1, %v27_v8  ;;  %347 = vmatpush3.msra.mxu1 %v118_v9  ;;  %v204_v22 = vld [vmem:[%s511_s5] sm:$0xff]  ;;  %s373_s5 = scalar_lea.vmem %s297_s15, 128 }
   0xa   :  { %348 = vmatprep.subr.mxu1 %v395_v1  ;;  %356 = vmatprep.mubr.msk.f32.mxu1 %vm396_vm0, %v395_v1  ;;  %v306_v23 = vld [vmem:[%s510_s4] ss:$0 sm:$0xff]  ;;  %p374_p0 = scmp.ne.s32.totalorder %s297_s15, %s373_s5  ;;  %p379_p2 = scmp.lt.s32.totalorder %s373_s5, %s373_s5 }
   0xb   :  { %349 = vmatpush3.msra.mxu1 %v117_v10  ;;  %359 = vmatprep.subr.mxu0 %v395_v1  ;;  %v308_v28 = vld [vmem:[%s512_s6] ss:$0 sm:$0xff] }
   0xc   :  { %350 = vmatprep.subr.mxu1 %v395_v1  ;;  %367 = vmatprep.mubr.msk.f32.mxu0 %vm396_vm0, %v395_v1  ;;  %p380_p3 = por %p379_p2, %p378_p1 }
   0xd   :  { %351 = vmatpush3.msra.mxu1 %v116_v11  ;;  %360 = vmatpush3.msra.mxu0 %v207_v14 }
   0xe   :  { %352 = vmatprep.subr.mxu1 %v395_v1  ;;  %361 = vmatprep.subr.mxu0 %v395_v1  ;;  %p381_p4 = pnand %p380_p3, %p374_p0 }
   0xf   :  { %353 = vmatpush3.msra.mxu1 %v115_v12  ;;  %362 = vmatpush3.msra.mxu0 %v206_v20 }
  0x10   :  { %354 = vmatprep.subr.mxu1 %v395_v1  ;;  %363 = vmatprep.subr.mxu0 %v395_v1 }
  0x11   :  { %355 = vmatpush3.msra.mxu1 %v114_v13  ;;  %364 = vmatpush3.msra.mxu0 %v205_v21 }
  0x12   :  { %365 = vmatprep.subr.mxu0 %v395_v1 }
  0x13   :  { %366 = vmatpush3.msra.mxu0 %v204_v22 }
  0xc9   :  { %v109_v16 = vpop.f32.mrf.mxu0 }
  0xca   :  { %v110_v17 = vadd.f32 %v304_v15, %v109_v16 }
  0xcb   :  { %v339_v18 = vpop.f32.mrf.mxu0 }
  0xcc   :  { %v113_v19 = vmax.f32 %v110_v17, 0.0 }
  0xce   :  { %357 = vmatmul.mubr.msk.f32.vlgmr.msra.gmra.mxu1 %vm129_vm2, %v113_v19 }
 0x18e   :  { %v199_v24 = vpop.f32.mrf.mxu1 }
 0x18f   :  { %v200_v25 = vadd.f32 %v306_v23, %v199_v24 }
 0x190   :  { %v358_v26 = vpop.f32.mrf.mxu1 }
 0x191   :  { %v203_v27 = vmax.f32 %v200_v25, 0.0 }
 0x193   :  { %368 = vmatmul.mubr.msk.f32.vlgmr.msra.gmra.mxu0 %vm39_vm1, %v203_v27 }
 0x253   :  { %v284_v29 = vpop.f32.mrf.mxu0 }
 0x254   :  { %v285_v30 = vadd.f32 %v308_v28, %v284_v29 }
 0x255   :  { %v369_v31 = vpop.f32.mrf.mxu0 }
 0x256   :  { %289 = vst.msk [vmem:[#allocation2] sm:$0xff] %vm288_vm3, %v285_v30 }
 0x257   :  { %384 = shalt.err (!%p381_p4)
}
 0x258   :  { %299 = dma.vmem_to_hbm [thread:$0]  %s297_s15, 128, %s513_s7, [#allocation3]  }
 0x259   :  { %393 = dma.done.wait [#allocation3], 128  }
 0x25a   :  { %394 = vsyncadd [#allocation3], 4294967168 }
 0x25b   :  { %303 = vsyncpa [#allocation3], 1 }

</bundles_post_ra>
